<compile_context>
chip_gen: v5e
topology: v5e:2x2
jax: 0.10.0
libtpu: 0.0.40
codegen_flags: <defaults>
</compile_context>

<pallas_src>
import functools

import jax
import jax.numpy as jnp
from jax.experimental import pallas as pl
from jax.experimental.pallas import tpu as pltpu


def _angle_loss_kernel(cos_ref, tgt_ref, phi_tgt_ref, coef_ref, loss_ref, *,
                       gamma, n_total):
    cos = cos_ref[...]                               # (TN, Cp) native dtype
    tgt = tgt_ref[...]                               # (TN, 1) int32
    phi_t = phi_tgt_ref[...].astype(jnp.float32)     # (TN, 1) phi at target column
    coef = coef_ref[0, 0]                            # scalar f32 = 1/(1+lamb)

    tn, cp = cos.shape
    col = jax.lax.broadcasted_iota(jnp.int32, (tn, cp), 1)
    is_tgt = col == tgt                              # one-hot of target column
    # NOTE: an out-of-range target index degenerates (no column selected) instead of
    # erroring like torch.gather; acceptable for this port.

    # cos at the target column, gathered from the resident tile (exactly one nonzero
    # per row -> exact in any dtype).
    cos_t = jnp.sum(jnp.where(is_tgt, cos, jnp.zeros_like(cos)),
                    axis=1, keepdims=True).astype(jnp.float32)
    # Margin-annealed target logit: cos*(1-coef) + phi*coef
    out_t = cos_t - cos_t * coef + phi_t * coef      # (TN, 1) f32

    # Stable LSE of the margin-modified row (row = cos, target entry -> out_t).
    # The unmasked row max is a valid stabilizer; the target exp is zeroed below.
    m = jnp.maximum(jnp.max(cos, axis=1, keepdims=True).astype(jnp.float32), out_t)
    e = jnp.exp(cos.astype(jnp.float32) - m)         # f32 upcast fused into the exp
    s = (jnp.sum(jnp.where(is_tgt, 0.0, e), axis=1, keepdims=True)
         + jnp.exp(out_t - m))                       # (TN, 1)
    logpt = (out_t - m) - jnp.log(s)                 # (TN, 1)

    if gamma == 0:
        loss_per = -logpt
    else:
        logpt = jnp.minimum(logpt, 0.0)              # guard pt>1 rounding -> NaN
        pt = jnp.exp(logpt)
        loss_per = -((1.0 - pt) ** gamma) * logpt

    # Mask padded rows of the final (partial) tile, then reduce to a per-tile scalar.
    row = pl.program_id(0) * tn + jax.lax.broadcasted_iota(jnp.int32, (tn, 1), 0)
    loss_ref[0, 0] = jnp.sum(jnp.where(row < n_total, loss_per, 0.0))


def _round_up(x, m):
    return ((x + m - 1) // m) * m


def _vmem_capacity_bytes():
    try:
        return int(pltpu.get_tpu_info().vmem_capacity_bytes)
    except Exception:
        return 64 * 1024 * 1024  # conservative (v7x per-TC) fallback


def _pick_tile_n(n, c_padded, itemsize, vmem_cap):
    # Live bytes per (row, class) element:
    #   2 * itemsize : double-buffered native cos tile
    #   ~16          : f32 intermediates (exp / where / mask) live inside the body
    per_elem = 2 * itemsize + 16
    budget = vmem_cap // 4
    tn = budget // max(1, per_elem * c_padded)
    tn = max(8, min(1024, tn - (tn % 8)))
    # Keep the row grid at >=2 (ideally ~4) steps for v7x's two TensorCores once N
    # is large, but never shrink tiles below ~512 rows (HBM-roofline sweet spot).
    if n >= 2 * 512:
        tn = min(tn, max(512, _round_up(pl.cdiv(n, 4), 8)))
    return min(tn, _round_up(n, 8))


@functools.lru_cache(maxsize=None)
def _build_angle_loss_fn(n, c, dtype_name, gamma):
    in_dtype = jnp.dtype(dtype_name)
    cp = c if c % 128 == 0 else _round_up(c, 128)    # lane-dense class axis
    vmem_cap = _vmem_capacity_bytes()
    tile_n = _pick_tile_n(n, cp, in_dtype.itemsize, vmem_cap)
    grid = pl.cdiv(n, tile_n)

    kernel = functools.partial(_angle_loss_kernel, gamma=gamma, n_total=n)

    cost = pl.CostEstimate(
        flops=6 * n * cp,
        transcendentals=n * cp,
        bytes_accessed=n * cp * in_dtype.itemsize + 3 * n * 4,
    )

    call = pl.pallas_call(
        kernel,
        out_shape=jax.ShapeDtypeStruct((grid, 1), jnp.float32),
        grid=(grid,),
        in_specs=[
            pl.BlockSpec((tile_n, cp), lambda i: (i, 0)),   # cos_theta (native dtype)
            pl.BlockSpec((tile_n, 1), lambda i: (i, 0)),    # target (int32)
            pl.BlockSpec((tile_n, 1), lambda i: (i, 0)),    # phi at target col (f32)
            pl.BlockSpec(memory_space=pltpu.MemorySpace.SMEM),  # coef scalar (1,1) f32
        ],
        out_specs=pl.BlockSpec((1, 1), lambda i: (i, 0),
                               memory_space=pltpu.MemorySpace.SMEM),
        compiler_params=pltpu.CompilerParams(
            dimension_semantics=("parallel",),
            vmem_limit_bytes=int(vmem_cap * 3 // 4),
        ),
        cost_estimate=cost,
    )

    @jax.jit
    def fn(cos_theta, phi_theta, target, lamb):
        tgt = target.reshape(-1, 1).astype(jnp.int32)
        # Only the target column of phi_theta is ever used.
        phi_tgt = jnp.take_along_axis(phi_theta, tgt, axis=1).astype(jnp.float32)
        coef = (1.0 / (1.0 + lamb.astype(jnp.float32))).reshape(1, 1)
        if cp != c:
            # Pad classes with a large negative so exp -> 0; keeps lanes dense.
            cos_in = jnp.pad(cos_theta, ((0, 0), (0, cp - c)), constant_values=-1e9)
        else:
            cos_in = cos_theta
        partials = call(cos_in, tgt, phi_tgt, coef)      # (grid, 1) f32 tile sums
        return jnp.sum(partials) / n                     # mean over real rows

    return fn


class AngleLossPallas:
    """Stateful wrapper mirroring the PyTorch module (it counter + lambda anneal)."""

    def __init__(self, gamma=0):
        self.gamma = gamma
        self.it = 0
        self.LambdaMin = 5.0
        self.LambdaMax = 1500.0
        self.lamb = 1500.0

    def __call__(self, inputs, target):
        cos_theta, phi_theta = inputs
        self.it += 1
        self.lamb = max(self.LambdaMin, self.LambdaMax / (1 + 0.1 * self.it))

        n, c = cos_theta.shape
        fn = _build_angle_loss_fn(n, c, jnp.dtype(cos_theta.dtype).name, self.gamma)
        return fn(cos_theta, phi_theta, target, jnp.float32(self.lamb))


def _reference_loss(cos_theta, phi_theta, target, lamb, gamma):
    n, c = cos_theta.shape
    onehot = jax.nn.one_hot(target, c, dtype=jnp.bool_)
    coef = 1.0 / (1.0 + lamb)
    output = jnp.where(onehot, cos_theta - cos_theta * coef + phi_theta * coef,
                       cos_theta)
    logsm = jax.nn.log_softmax(output, axis=1)
    logpt = jnp.take_along_axis(logsm, target.reshape(-1, 1), axis=1).reshape(-1)
    pt = jnp.exp(logpt)
    loss = -((1.0 - pt) ** gamma) * logpt if gamma != 0 else -logpt
    return jnp.mean(loss)


if __name__ == "__main__":
    key = jax.random.PRNGKey(0)
    k1, k2, k3 = jax.random.split(key, 3)

    # Test 1: original small case (gamma=0, f32, N multiple of 8).
    N, C = 8, 16
    cos_theta = jnp.tanh(jax.random.normal(k1, (N, C), dtype=jnp.float32))
    phi_theta = jnp.tanh(jax.random.normal(k2, (N, C), dtype=jnp.float32)) - 0.5
    target = jax.random.randint(k3, (N,), 0, C, dtype=jnp.int32)

    loss_fn = AngleLossPallas(gamma=0)
    loss = jax.block_until_ready(loss_fn((cos_theta, phi_theta), target))

    # it == 1 after the call, so lamb = max(5, 1500 / 1.1)
    expected_lamb = max(5.0, 1500.0 / (1 + 0.1 * 1))
    ref = _reference_loss(cos_theta, phi_theta, target, expected_lamb, gamma=0)
    assert abs(float(loss) - float(ref)) < 1e-4, (float(loss), float(ref))

    # Test 2: ragged N (padded rows masked), C not a multiple of 128, gamma=2.
    k4, k5, k6 = jax.random.split(jax.random.PRNGKey(1), 3)
    N2, C2 = 13, 10
    cos2 = jnp.tanh(jax.random.normal(k4, (N2, C2), dtype=jnp.float32))
    phi2 = jnp.tanh(jax.random.normal(k5, (N2, C2), dtype=jnp.float32)) - 0.5
    tgt2 = jax.random.randint(k6, (N2,), 0, C2, dtype=jnp.int32)

    loss_fn2 = AngleLossPallas(gamma=2)
    loss2 = jax.block_until_ready(loss_fn2((cos2, phi2), tgt2))
    ref2 = _reference_loss(cos2, phi2, tgt2, expected_lamb, gamma=2)
    assert abs(float(loss2) - float(ref2)) < 1e-4, (float(loss2), float(ref2))

    print("KERNEL_OK")
</pallas_src>

<mosaic_0001>
module attributes {stable_mosaic.version = 11 : i64} {
  func.func @_angle_loss_kernel(%arg0: i32, %arg1: memref<8x128xf32, #tpu.memory_space<vmem>>, %arg2: memref<8x1xi32, #tpu.memory_space<vmem>>, %arg3: memref<8x1xf32, #tpu.memory_space<vmem>>, %arg4: memref<1x1xf32, #tpu.memory_space<smem>>, %arg5: memref<1x1xf32, #tpu.memory_space<smem>>) attributes {dimension_semantics = [#tpu.dimension_semantics<parallel>], iteration_bounds = array<i64: 1>, scalar_prefetch = 0 : i64, scratch_operands = 0 : i64, tpu.core_type = #tpu.core_type<tc>, window_params = [{transform_indices = @transform_0, window_bounds = array<i64: 8, 128>}, {transform_indices = @transform_1, window_bounds = array<i64: 8, 1>}, {transform_indices = @transform_2, window_bounds = array<i64: 8, 1>}, {transform_indices = @transform_3, window_bounds = array<i64: 1, 1>}, {transform_indices = @transform_4, window_bounds = array<i64: 1, 1>}]} {
    %c0 = arith.constant 0 : index
    %c0_0 = arith.constant 0 : index
    %0 = vector.load %arg1[%c0, %c0_0] : memref<8x128xf32, #tpu.memory_space<vmem>>, vector<8x128xf32>
    %c0_1 = arith.constant 0 : index
    %c0_2 = arith.constant 0 : index
    %1 = vector.load %arg2[%c0_1, %c0_2] : memref<8x1xi32, #tpu.memory_space<vmem>>, vector<8x1xi32>
    %c0_3 = arith.constant 0 : index
    %c0_4 = arith.constant 0 : index
    %2 = vector.load %arg3[%c0_3, %c0_4] : memref<8x1xf32, #tpu.memory_space<vmem>>, vector<8x1xf32>
    %c0_5 = arith.constant 0 : index
    %c0_6 = arith.constant 0 : index
    %3 = memref.load %arg4[%c0_5, %c0_6] : memref<1x1xf32, #tpu.memory_space<smem>>
    %4 = tpu.iota {dimensions = array<i32: 1>} : vector<8x128xi32>
    %5 = vector.broadcast %1 : vector<8x1xi32> to vector<8x128xi32>
    %6 = arith.cmpi eq, %4, %5 : vector<8x128xi32>
    %cst = arith.constant 0.000000e+00 : f32
    %7 = vector.broadcast %cst : f32 to vector<8x128xf32>
    %8 = arith.select %6, %0, %7 : vector<8x128xi1>, vector<8x128xf32>
    %cst_7 = arith.constant dense<0.000000e+00> : vector<8xf32>
    %9 = vector.multi_reduction <add>, %8, %cst_7 [1] : vector<8x128xf32> to vector<8xf32>
    %10 = vector.shape_cast %9 : vector<8xf32> to vector<8x1xf32>
    %11 = vector.broadcast %3 : f32 to vector<8x1xf32>
    %12 = arith.mulf %10, %11 : vector<8x1xf32>
    %13 = arith.subf %10, %12 : vector<8x1xf32>
    %14 = vector.broadcast %3 : f32 to vector<8x1xf32>
    %15 = arith.mulf %2, %14 : vector<8x1xf32>
    %16 = arith.addf %13, %15 : vector<8x1xf32>
    %cst_8 = arith.constant dense<0xFF800000> : vector<8xf32>
    %17 = vector.multi_reduction <maximumf>, %0, %cst_8 [1] : vector<8x128xf32> to vector<8xf32>
    %18 = vector.shape_cast %17 : vector<8xf32> to vector<8x1xf32>
    %19 = arith.maximumf %18, %16 : vector<8x1xf32>
    %20 = vector.broadcast %19 : vector<8x1xf32> to vector<8x128xf32>
    %21 = arith.subf %0, %20 : vector<8x128xf32>
    %22 = math.exp %21 : vector<8x128xf32>
    %cst_9 = arith.constant 0.000000e+00 : f32
    %23 = vector.broadcast %cst_9 : f32 to vector<8x128xf32>
    %24 = arith.select %6, %23, %22 : vector<8x128xi1>, vector<8x128xf32>
    %cst_10 = arith.constant dense<0.000000e+00> : vector<8xf32>
    %25 = vector.multi_reduction <add>, %24, %cst_10 [1] : vector<8x128xf32> to vector<8xf32>
    %26 = vector.shape_cast %25 : vector<8xf32> to vector<8x1xf32>
    %27 = arith.subf %16, %19 : vector<8x1xf32>
    %28 = math.exp %27 : vector<8x1xf32>
    %29 = arith.addf %26, %28 : vector<8x1xf32>
    %30 = arith.subf %16, %19 : vector<8x1xf32>
    %31 = math.log %29 : vector<8x1xf32>
    %32 = arith.subf %30, %31 : vector<8x1xf32>
    %cst_11 = arith.constant 0.000000e+00 : f32
    %33 = vector.broadcast %cst_11 : f32 to vector<8x1xf32>
    %34 = arith.subf %33, %32 : vector<8x1xf32>
    %c8_i32 = arith.constant 8 : i32
    %35 = arith.muli %arg0, %c8_i32 : i32
    %36 = tpu.iota {dimensions = array<i32: 0>} : vector<8x1xi32>
    %37 = vector.broadcast %35 : i32 to vector<8x1xi32>
    %38 = arith.addi %37, %36 : vector<8x1xi32>
    %c8_i32_12 = arith.constant 8 : i32
    %39 = vector.broadcast %c8_i32_12 : i32 to vector<8x1xi32>
    %40 = arith.cmpi slt, %38, %39 : vector<8x1xi32>
    %cst_13 = arith.constant 0.000000e+00 : f32
    %41 = vector.broadcast %cst_13 : f32 to vector<8x1xf32>
    %42 = arith.select %40, %34, %41 : vector<8x1xi1>, vector<8x1xf32>
    %43 = vector.shape_cast %42 : vector<8x1xf32> to vector<1x8x1xf32>
    %cst_14 = arith.constant dense<0.000000e+00> : vector<1xf32>
    %44 = vector.multi_reduction <add>, %43, %cst_14 [1, 2] : vector<1x8x1xf32> to vector<1xf32>
    %45 = vector.shape_cast %44 : vector<1xf32> to vector<1x1x1xf32>
    %46 = vector.extract %45[0, 0, 0] : f32 from vector<1x1x1xf32>
    %c0_15 = arith.constant 0 : index
    %c0_16 = arith.constant 0 : index
    %47 = memref.load %arg5[%c0_15, %c0_16] : memref<1x1xf32, #tpu.memory_space<smem>>
    memref.store %46, %arg5[%c0_15, %c0_16] : memref<1x1xf32, #tpu.memory_space<smem>>
    return
  }
  func.func @transform_0(%arg0: i32) -> (i32, i32) {
    %c0_i32 = arith.constant 0 : i32
    %c0_i32_0 = arith.constant 0 : i32
    return %arg0, %c0_i32 : i32, i32
  }
  func.func @transform_1(%arg0: i32) -> (i32, i32) {
    %c0_i32 = arith.constant 0 : i32
    %c0_i32_0 = arith.constant 0 : i32
    return %arg0, %c0_i32 : i32, i32
  }
  func.func @transform_2(%arg0: i32) -> (i32, i32) {
    %c0_i32 = arith.constant 0 : i32
    %c0_i32_0 = arith.constant 0 : i32
    return %arg0, %c0_i32 : i32, i32
  }
  func.func @transform_3(%arg0: i32) -> (i32, i32) {
    %c0_i32 = arith.constant 0 : i32
    %c0_i32_0 = arith.constant 0 : i32
    %c0_i32_1 = arith.constant 0 : i32
    return %c0_i32, %c0_i32_0 : i32, i32
  }
  func.func @transform_4(%arg0: i32) -> (i32, i32) {
    %c0_i32 = arith.constant 0 : i32
    %c0_i32_0 = arith.constant 0 : i32
    return %arg0, %c0_i32 : i32, i32
  }
}

</mosaic_0001>

<bundles_post_ra>
// kernel: fn.1
= control target key start
LH: loop header
LB: loop body
LE: loop exit
PB: predicated region body
PF: predicated region fallthrough
CT: control target
= control target key end

     0   :  { %s164_s0 = inlined_call_operand.vmem [shape: f32[8,128], index: 0, kind: input, shape index: {}]   ;;  %s165_s1 = inlined_call_operand.vmem [shape: s32[8,1], index: 1, kind: input, shape index: {}]   ;;  %s166_s2 = inlined_call_operand.vmem [shape: f32[8,1], index: 2, kind: input, shape index: {}]   ;;  %s167_s3 = inlined_call_operand.<no memory space> [shape: f32[1,1], index: 3, kind: input, shape index: {}]   ;;  %s168_s4 = inlined_call_operand.hbm [shape: f32[1,1], index: 4, kind: output, shape index: {}]  }
   0x1   :  { %v20_v0 = vld [vmem:[%s165_s1] sm:$0xff] }
   0x2   :  { %10 = vsyncpa [#allocation4], 0  ;;  %v120_v1 = vmov 0   ;;  %v19_v2 = vld [vmem:[%s164_s0] sm:$0xff]  ;;  %v23_v3 = vlaneseq  ;;  %v32_v8 = vstv %s167_s3  ;;  %vm66_vm1 = vcmask 7168   ;;  %s84_s3 = sshll.u32 %s168_s4, 4  ;;  %s85_s3 = int_to_ptr.hbm [resolvable:$true] %s84_s3 }
   0x3   :  { %98 = vset.pattern.permute.xlu0 %v120_v1  ;;  %99 = vset.pattern.permute.xlu1 %v120_v1  ;;  %v21_v7 = vld [vmem:[%s166_s2] sm:$0xff]  ;;  %s121_s23 = smov [#allocation3]  }
   0x4   :  { %26 = vperm.xlu0 %98, %v20_v0   ;;  %37 = vmax.xlane.f32.xlu1 %v19_v2  ;;  %v24_v4 = vand.u32 127, %v23_v3  ;;  %v35_v10 = vmul.f32 %v32_v8, %v21_v7 }
  0x76   :  { %v27_v5 = vpop.permute.xlu0 %26 }
  0x77   :  { %vm28_vm0 = vcmp.eq.s32.totalorder %v24_v4, %v27_v5  ;;  %v38_v13 = vpop.xlane.xlu1 %37 }
  0x78   :  { %v29_v6 = vsel %vm28_vm0, %v19_v2, 0.0 }
  0x79   :  { %30 = vadd.xlane.f32.xlu0 %v29_v6 }
  0xec   :  { %v31_v9 = vpop.xlane.xlu0 %30 }
  0xed   :  { %v33_v11 = vmul.f32 %v32_v8, %v31_v9 }
  0xef   :  { %v34_v12 = vsub.f32 %v31_v9, %v33_v11 }
  0xf1   :  { %v36_v14 = vadd.f32 %v35_v10, %v34_v12 }
  0xf3   :  { %v39_v15 = vmax.f32 %v38_v13, %v36_v14 }
  0xf5   :  { %v51_v16 = vsub.f32 %v36_v14, %v39_v15  ;;  %42 = vperm.xlu1 %99, %v39_v15  }
  0xf7   :  { %v52_v22 = vmul.f32 1.442695, %v51_v16 }
 0x167   :  { %v43_v17 = vpop.permute.xlu1 %42 }
 0x168   :  { %v45_v18 = vsub.f32 %v19_v2, %v43_v17 }
 0x16a   :  { %v46_v19 = vmul.f32 1.442695, %v45_v18 }
 0x16c   :  { %100 = vpow2.f32 %v46_v19 }
 0x16d   :  { %102 = vpow2.f32 %v52_v22 }
 0x172   :  { %v101_v20 = vpop.eup %100 }
 0x173   :  { %v48_v21 = vsel %vm28_vm0, 0.0, %v101_v20  ;;  %v103_v23 = vpop.eup %102 }
 0x174   :  { %49 = vadd.xlane.f32.xlu2 %v48_v21 }
 0x1e7   :  { %v50_v24 = vpop.xlane.xlu2 %49 }
 0x1e8   :  { %v54_v25 = vadd.f32 %v103_v23, %v50_v24 }
 0x1ea   :  { %104 = vlog2.f32 %v54_v25 }
 0x1f0   :  { %v105_v26 = vpop.eup %104 }
 0x1f1   :  { %v56_v27 = vmul.f32 0.6931472, %v105_v26 }
 0x1f3   :  { %v57_v28 = vsub.f32 %v51_v16, %v56_v27 }
 0x1f5   :  { %v58_v29 = vsub.f32 0.0, %v57_v28 }
 0x1f7   :  { %v67_v30 = vsel %vm66_vm1, %v58_v29, 0.0 }
 0x1f8   :  { %68 = vadd.xlane.f32.xlu2 %v67_v30 }
 0x26b   :  { %v69_v31 = vpop.xlane.xlu2 %68 }
 0x26c   :  { %v70_v32 = vrot.slane %v69_v31, 4 }
 0x26e   :  { %v71_v33 = vadd.f32 %v70_v32, %v69_v31 }
 0x270   :  { %v72_v34 = vrot.slane %v71_v33, 2 }
 0x272   :  { %v73_v35 = vadd.f32 %v72_v34, %v71_v33 }
 0x274   :  { %v74_v36 = vrot.slane %v73_v35, 1 }
 0x276   :  { %v75_v37 = vadd.f32 %v74_v36, %v73_v35 }
 0x278   :  { %94 = vpush %v75_v37 }
 0x2a9   :  { %s95_s22 = spop %94 }
 0x2aa   :  { %78 = sst [smem:[#allocation3]] %s95_s22 }
 0x2ab   :  { %87 = dma.smem_to_hbm %s121_s23, 16, %s85_s3, [#allocation4]  }
 0x2ac   :  { %118 = dma.done.wait [#allocation4], 16  }
 0x2ad   :  { %119 = vsyncadd [#allocation4], 4294967280 }
 0x2ae   :  { %92 = sfence }
 0x2af   :  { %93 = vsyncpa [#allocation4], 1 }

</bundles_post_ra>
